<compile_context>
chip_gen: v6e
topology: v6e:2x2x1
jax: 0.10.0
libtpu: 0.0.40
codegen_flags: <defaults>
</compile_context>

<pallas_src>
import functools

import jax
import jax.numpy as jnp
from jax import lax
from jax.experimental import pallas as pl
from jax.experimental.pallas import tpu as pltpu

LANE = 128
STRIP_ROWS = 64                 # rows per in-kernel strip (8 f32 vregs / array)
DEFAULT_BLOCK_ROWS = 2048       # v5e / v6e HBM-tile rows (sweepable)
DEFAULT_BLOCK_ROWS_2TC = 4096   # v7x-class (2 TensorCores, 3.2 TB/s per TC)


def _cdiv(a, b):
    return -(-a // b)


def _round_up(x, m):
    return _cdiv(x, m) * m


def _sublane_align(*dtypes):
    # sub-32-bit dtypes pack along sublanes: f32 -> 8 rows, bf16 -> 16, int8 -> 32
    a = 8
    for dt in dtypes:
        a = max(a, 8 * (4 // max(1, jnp.dtype(dt).itemsize)))
    return a


def _num_tensorcores():
    """2 for v7x-class megacore chips (2 resident TensorCores), else 1."""
    try:
        kind = jax.devices()[0].device_kind.lower()
    except Exception:
        return 1
    if "v7" in kind or "7x" in kind:
        return 2
    return 1


def _modulator(d, gamma):
    """|t - x| ** gamma, specialised on the compile-time gamma (EUP relief)."""
    g = float(gamma)
    if g == 0.0:
        return jnp.ones_like(d)
    if g == 1.0:
        return jnp.abs(d)
    if g == 2.0:
        return d * d
    if g.is_integer() and 0.0 < g <= 8.0:
        ad = jnp.abs(d)
        r = ad
        for _ in range(int(g) - 1):
            r = r * ad
        return r
    # abs *inside* the power: identical to torch.abs((t-x)**gamma) for every
    # integer gamma, and avoids NaN for non-integer gamma (negative base).
    return jnp.abs(d) ** g


def _loss_elem(x, t, gamma):
    # Factored form: -mod * (t*log(x+eps) + (1-t)*log(1-x+eps))  (one fewer mul,
    # same math as the torch reference up to FP reassociation).
    mod = _modulator(t - x, gamma)
    return -(mod * (t * jnp.log(x + 1e-12)
                    + (1.0 - t) * jnp.log(1.0 - x + 1e-12)))


def _valid_mask(row0, nrows, n):
    """Mask of flattened element index < n for rows starting at `row0`."""
    full_rows = n // LANE
    rem = n % LANE
    ridx = row0 + lax.broadcasted_iota(jnp.int32, (nrows, LANE), 0)
    if rem == 0:
        return ridx < full_rows
    cidx = lax.broadcasted_iota(jnp.int32, (nrows, LANE), 1)
    return (ridx < full_rows) | ((ridx == full_rows) & (cidx < rem))


# ---------------------------------------------------------------------------
# Kernels
# ---------------------------------------------------------------------------
def _center_loss_sum_kernel(x_ref, t_ref, o_ref, *, gamma, n, tile_rows,
                            strip_rows, blocks_per_split, masked):
    c = pl.program_id(0)   # split (CORE_PARALLEL on 2-TC chips, else size 1)
    j = pl.program_id(1)   # row-block within split ('arbitrary' reduction axis)

    @pl.when(j == 0)
    def _():
        o_ref[...] = jnp.zeros_like(o_ref)

    # Logical (unclamped) row offset of this block; duplicated (clamped)
    # trailing blocks and stale edge-block rows all land outside [0, n).
    row0 = (c * blocks_per_split + j) * tile_rows

    full_strips = tile_rows // strip_rows
    rem_rows = tile_rows - full_strips * strip_rows

    def accumulate(apply_mask):
        def strip(r, nrows):
            x = x_ref[pl.ds(r, nrows), :].astype(jnp.float32)
            t = t_ref[pl.ds(r, nrows), :].astype(jnp.float32)
            loss = _loss_elem(x, t, gamma)
            if apply_mask:
                # Select on the *loss* (overhang reads stale VMEM -> may be NaN).
                valid = _valid_mask(row0 + r, nrows, n)
                loss = jnp.where(valid, loss, 0.0)
            # Fold the strip into one (8, 128) vreg with pure VPU adds; the
            # single cross-lane reduce happens in JAX on the tiny partials.
            o_ref[...] += loss.reshape(-1, 8, LANE).sum(axis=0)

        if full_strips > 0:
            def body(s, carry):
                strip(pl.multiple_of(s * strip_rows, strip_rows), strip_rows)
                return carry
            lax.fori_loop(0, full_strips, body, 0)
        if rem_rows > 0:
            strip(full_strips * strip_rows, rem_rows)

    if not masked:
        accumulate(False)
    else:
        # Only the block(s) that actually overhang n pay the masking work.
        needs_mask = (row0 + tile_rows) > (n // LANE)

        @pl.when(jnp.logical_not(needs_mask))
        def _():
            accumulate(False)

        @pl.when(needs_mask)
        def _():
            accumulate(True)


def _center_loss_none_kernel(x_ref, t_ref, o_ref, *, gamma, tile_rows,
                             strip_rows):
    full_strips = tile_rows // strip_rows
    rem_rows = tile_rows - full_strips * strip_rows

    def strip(r, nrows):
        x = x_ref[pl.ds(r, nrows), :].astype(jnp.float32)
        t = t_ref[pl.ds(r, nrows), :].astype(jnp.float32)
        o_ref[pl.ds(r, nrows), :] = _loss_elem(x, t, gamma).astype(o_ref.dtype)

    if full_strips > 0:
        def body(s, carry):
            strip(pl.multiple_of(s * strip_rows, strip_rows), strip_rows)
            return carry
        lax.fori_loop(0, full_strips, body, 0)
    if rem_rows > 0:
        strip(full_strips * strip_rows, rem_rows)


# ---------------------------------------------------------------------------
# Wrapper
# ---------------------------------------------------------------------------
def center_loss(inputs, targets, gamma: float = 1.0, reduction: str = "sum",
                block_rows: int | None = None, num_splits: int | None = None):
    """Pallas implementation of Center_loss.forward (default reduction='sum')."""
    if reduction not in ("none", "mean", "sum"):
        raise ValueError(
            f"Invalid Value for arg 'reduction': '{reduction}'. "
            "Supported reduction modes: 'none', 'mean', 'sum'")

    orig_shape = inputs.shape
    n = inputs.size

    if n == 0:
        if reduction == "none":
            return jnp.zeros(orig_shape, inputs.dtype)
        zero = jnp.zeros((), jnp.float32)
        return zero if reduction == "sum" else zero / jnp.float32(0)  # mean(empty)=nan

    # Keep native dtypes on the HBM side (no wrapper upcast); cast in VMEM.
    x = inputs.reshape(-1)
    t = targets.reshape(-1)

    rows = _cdiv(n, LANE)
    padded_n = rows * LANE
    if padded_n != n:
        # Only for truly ragged n: at most 127 extra elements.
        x = jnp.pad(x, (0, padded_n - n))
        t = jnp.pad(t, (0, padded_n - n))
    x2 = x.reshape(rows, LANE)
    t2 = t.reshape(rows, LANE)

    cores = _num_tensorcores()
    if block_rows is None:
        block_rows = DEFAULT_BLOCK_ROWS_2TC if cores > 1 else DEFAULT_BLOCK_ROWS

    align = _sublane_align(x.dtype, t.dtype)
    # tile_rows is always a multiple of `align` (>= 8); partial trailing blocks
    # are handled by Pallas edge blocks + the in-kernel mask.
    tile_rows = min(_round_up(block_rows, align), _round_up(rows, align))
    num_row_blocks = _cdiv(rows, tile_rows)
    itemsize = jnp.dtype(inputs.dtype).itemsize

    if reduction == "none":
        spec = pl.BlockSpec((tile_rows, LANE), lambda i: (i, 0))
        out = pl.pallas_call(
            functools.partial(_center_loss_none_kernel, gamma=gamma,
                              tile_rows=tile_rows, strip_rows=STRIP_ROWS),
            out_shape=jax.ShapeDtypeStruct((rows, LANE), inputs.dtype),
            grid=(num_row_blocks,),
            in_specs=[spec, spec],
            out_specs=spec,
            compiler_params=pltpu.CompilerParams(
                dimension_semantics=("parallel",)),
            cost_estimate=pl.CostEstimate(
                flops=10 * n, transcendentals=2 * n,
                bytes_accessed=3 * n * itemsize),
        )(x2, t2)
        if padded_n == n:
            return out.reshape(orig_shape)          # no slice in the aligned case
        return out.reshape(-1)[:n].reshape(orig_shape)

    # ---- sum / mean path ----
    if num_splits is None:
        num_splits = cores
    n_splits = 2 if (num_splits > 1 and num_row_blocks > 1) else 1
    blocks_per_split = _cdiv(num_row_blocks, n_splits)
    covered = n_splits * blocks_per_split * tile_rows * LANE
    masked = covered != n

    def in_map(c, j):
        # Clamp so a duplicated trailing block never DMAs out of bounds; its
        # contribution is masked to zero inside the kernel.
        return (jnp.minimum(c * blocks_per_split + j, num_row_blocks - 1), 0)

    in_spec = pl.BlockSpec((tile_rows, LANE), in_map)

    if n_splits > 1:
        # Genuinely shard the leading axis across TensorCores (v7x-class).
        dims = (pltpu.CORE_PARALLEL, pltpu.ARBITRARY)
    else:
        dims = ("arbitrary", "arbitrary")

    partials = pl.pallas_call(
        functools.partial(
            _center_loss_sum_kernel, gamma=gamma, n=n, tile_rows=tile_rows,
            strip_rows=STRIP_ROWS, blocks_per_split=blocks_per_split,
            masked=masked),
        out_shape=jax.ShapeDtypeStruct((n_splits * 8, LANE), jnp.float32),
        grid=(n_splits, blocks_per_split),
        in_specs=[in_spec, in_spec],
        out_specs=pl.BlockSpec((8, LANE), lambda c, j: (c, 0)),
        compiler_params=pltpu.CompilerParams(dimension_semantics=dims),
        cost_estimate=pl.CostEstimate(
            flops=10 * n, transcendentals=2 * n,
            bytes_accessed=2 * n * itemsize + n_splits * 8 * LANE * 4),
    )(x2, t2)

    total = jnp.sum(partials)
    if reduction == "sum":
        return total
    return total / jnp.float32(n)


def _reference(inputs, targets, gamma=1.0, reduction="sum"):
    x = inputs.astype(jnp.float32)
    t = targets.astype(jnp.float32)
    loss = _loss_elem(x, t, gamma)
    if reduction == "sum":
        return jnp.sum(loss)
    if reduction == "mean":
        return jnp.mean(loss)
    return loss


if __name__ == "__main__":
    key = jax.random.PRNGKey(0)

    def make(shape, k):
        k1, k2 = jax.random.split(k)
        x = jax.nn.sigmoid(jax.random.normal(k1, shape, dtype=jnp.float32))
        t = (jax.random.uniform(k2, shape) > 0.5).astype(jnp.float32)
        return x, t

    # 1) small lane-aligned input (no pad, no slice): sum / mean / none
    x, t = make((2, 4, 16, 16), jax.random.fold_in(key, 0))
    out = jax.block_until_ready(center_loss(x, t, gamma=1.0, reduction="sum"))
    ref = _reference(x, t, gamma=1.0, reduction="sum")
    assert jnp.isfinite(out) and jnp.allclose(out, ref, rtol=1e-4, atol=1e-4), (out, ref)

    out_m = jax.block_until_ready(center_loss(x, t, gamma=2.0, reduction="mean"))
    ref_m = _reference(x, t, gamma=2.0, reduction="mean")
    assert jnp.allclose(out_m, ref_m, rtol=1e-4, atol=1e-4), (out_m, ref_m)

    out_n = jax.block_until_ready(center_loss(x, t, gamma=1.0, reduction="none"))
    ref_n = _reference(x, t, gamma=1.0, reduction="none")
    assert out_n.shape == x.shape
    assert jnp.allclose(out_n, ref_n, rtol=1e-5, atol=1e-5)

    # 2) small block_rows -> multi-block accumulation along the reduction axis
    x, t = make((4, 8, 16, 16), jax.random.fold_in(key, 1))
    out = jax.block_until_ready(center_loss(x, t, 1.0, "sum", block_rows=8))
    ref = _reference(x, t, 1.0, "sum")
    assert jnp.allclose(out, ref, rtol=1e-4, atol=1e-4), (out, ref)

    # 3) odd number of row blocks (duplicate clamped block + mask on 2-TC chips)
    x, t = make((3, 8, 128), jax.random.fold_in(key, 2))
    out = jax.block_until_ready(center_loss(x, t, 2.0, "sum", block_rows=8))
    ref = _reference(x, t, 2.0, "sum")
    assert jnp.allclose(out, ref, rtol=1e-4, atol=1e-4), (out, ref)

    # 4) ragged element count (not a multiple of 128) -> minimal pad + in-kernel mask
    x, t = make((3, 5, 41), jax.random.fold_in(key, 3))
    out = jax.block_until_ready(center_loss(x, t, 1.0, "sum"))
    ref = _reference(x, t, 1.0, "sum")
    assert jnp.allclose(out, ref, rtol=1e-4, atol=1e-4), (out, ref)
    out_n = jax.block_until_ready(center_loss(x, t, 1.0, "none"))
    assert jnp.allclose(out_n, _reference(x, t, 1.0, "none"), rtol=1e-5, atol=1e-5)

    # 5) larger input: default tiles, 64-row strip loop, multi-block grid
    #    (and the 2-way CORE_PARALLEL split on 2-TensorCore chips)
    x, t = make((4, 16, 128, 128), jax.random.fold_in(key, 4))
    out = jax.block_until_ready(center_loss(x, t, 2.0, "sum"))
    ref = _reference(x, t, 2.0, "sum")
    assert jnp.allclose(out, ref, rtol=2e-4, atol=1e-2), (out, ref)

    print("KERNEL_OK")
</pallas_src>

<mosaic_0001>
module attributes {stable_mosaic.version = 11 : i64} {
  func.func @_center_loss_sum_kernel(%arg0: i32, %arg1: i32, %arg2: memref<16x128xf32, #tpu.memory_space<vmem>>, %arg3: memref<16x128xf32, #tpu.memory_space<vmem>>, %arg4: memref<8x128xf32, #tpu.memory_space<vmem>>) attributes {dimension_semantics = [#tpu.dimension_semantics<arbitrary>, #tpu.dimension_semantics<arbitrary>], iteration_bounds = array<i64: 1, 1>, scalar_prefetch = 0 : i64, scratch_operands = 0 : i64, tpu.core_type = #tpu.core_type<tc>, window_params = [{transform_indices = @transform_0, window_bounds = array<i64: 16, 128>}, {transform_indices = @transform_1, window_bounds = array<i64: 16, 128>}, {transform_indices = @transform_2, window_bounds = array<i64: 8, 128>}]} {
    %c0_i32 = arith.constant 0 : i32
    %0 = arith.cmpi eq, %arg1, %c0_i32 : i32
    %1 = arith.extui %0 : i1 to i32
    %c0_i32_0 = arith.constant 0 : i32
    %2 = arith.cmpi ne, %1, %c0_i32_0 : i32
    scf.if %2 {
      %cst_13 = arith.constant 0.000000e+00 : f32
      %28 = vector.broadcast %cst_13 : f32 to vector<8x128xf32>
      %c0_14 = arith.constant 0 : index
      %c0_15 = arith.constant 0 : index
      %29 = vector.load %arg4[%c0_14, %c0_15] : memref<8x128xf32, #tpu.memory_space<vmem>>, vector<8x128xf32>
      tpu.vector_store %arg4[%c0_14, %c0_15], %28 {strides = array<i32>} : memref<8x128xf32, #tpu.memory_space<vmem>>, vector<8x128xf32>,
    } else {
    }
    %c0 = arith.constant 0 : index
    %c0_1 = arith.constant 0 : index
    %3 = vector.load %arg2[%c0, %c0_1] : memref<16x128xf32, #tpu.memory_space<vmem>>, vector<16x128xf32>
    %c0_2 = arith.constant 0 : index
    %c0_3 = arith.constant 0 : index
    %4 = vector.load %arg3[%c0_2, %c0_3] : memref<16x128xf32, #tpu.memory_space<vmem>>, vector<16x128xf32>
    %5 = arith.subf %4, %3 : vector<16x128xf32>
    %6 = math.absf %5 : vector<16x128xf32>
    %cst = arith.constant 9.99999996E-13 : f32
    %7 = vector.broadcast %cst : f32 to vector<16x128xf32>
    %8 = arith.addf %3, %7 : vector<16x128xf32>
    %9 = math.log %8 : vector<16x128xf32>
    %10 = arith.mulf %4, %9 : vector<16x128xf32>
    %cst_4 = arith.constant 1.000000e+00 : f32
    %11 = vector.broadcast %cst_4 : f32 to vector<16x128xf32>
    %12 = arith.subf %11, %4 : vector<16x128xf32>
    %cst_5 = arith.constant 1.000000e+00 : f32
    %13 = vector.broadcast %cst_5 : f32 to vector<16x128xf32>
    %14 = arith.subf %13, %3 : vector<16x128xf32>
    %cst_6 = arith.constant 9.99999996E-13 : f32
    %15 = vector.broadcast %cst_6 : f32 to vector<16x128xf32>
    %16 = arith.addf %14, %15 : vector<16x128xf32>
    %17 = math.log %16 : vector<16x128xf32>
    %18 = arith.mulf %12, %17 : vector<16x128xf32>
    %19 = arith.addf %10, %18 : vector<16x128xf32>
    %20 = arith.mulf %6, %19 : vector<16x128xf32>
    %cst_7 = arith.constant 0.000000e+00 : f32
    %21 = vector.broadcast %cst_7 : f32 to vector<16x128xf32>
    %22 = arith.subf %21, %20 : vector<16x128xf32>
    %c0_8 = arith.constant 0 : index
    %c0_9 = arith.constant 0 : index
    %23 = vector.load %arg4[%c0_8, %c0_9] : memref<8x128xf32, #tpu.memory_space<vmem>>, vector<8x128xf32>
    %24 = vector.shape_cast %22 : vector<16x128xf32> to vector<2x8x128xf32>
    %cst_10 = arith.constant dense<0.000000e+00> : vector<8x128xf32>
    %25 = vector.multi_reduction <add>, %24, %cst_10 [0] : vector<2x8x128xf32> to vector<8x128xf32>
    %26 = arith.addf %23, %25 : vector<8x128xf32>
    %c0_11 = arith.constant 0 : index
    %c0_12 = arith.constant 0 : index
    %27 = vector.load %arg4[%c0_11, %c0_12] : memref<8x128xf32, #tpu.memory_space<vmem>>, vector<8x128xf32>
    tpu.vector_store %arg4[%c0_11, %c0_12], %26 {strides = array<i32>} : memref<8x128xf32, #tpu.memory_space<vmem>>, vector<8x128xf32>,
    return
  }
  func.func @transform_0(%arg0: i32, %arg1: i32) -> (i32, i32) {
    %c1_i32 = arith.constant 1 : i32
    %0 = arith.muli %arg0, %c1_i32 : i32
    %1 = arith.addi %0, %arg1 : i32
    %c0_i32 = arith.constant 0 : i32
    %2 = arith.minsi %1, %c0_i32 : i32
    %c0_i32_0 = arith.constant 0 : i32
    %c0_i32_1 = arith.constant 0 : i32
    return %2, %c0_i32_0 : i32, i32
  }
  func.func @transform_1(%arg0: i32, %arg1: i32) -> (i32, i32) {
    %c1_i32 = arith.constant 1 : i32
    %0 = arith.muli %arg0, %c1_i32 : i32
    %1 = arith.addi %0, %arg1 : i32
    %c0_i32 = arith.constant 0 : i32
    %2 = arith.minsi %1, %c0_i32 : i32
    %c0_i32_0 = arith.constant 0 : i32
    %c0_i32_1 = arith.constant 0 : i32
    return %2, %c0_i32_0 : i32, i32
  }
  func.func @transform_2(%arg0: i32, %arg1: i32) -> (i32, i32) {
    %c0_i32 = arith.constant 0 : i32
    %c0_i32_0 = arith.constant 0 : i32
    return %arg0, %c0_i32 : i32, i32
  }
}

</mosaic_0001>

<bundles_post_ra>
// kernel: tpu_custom_call.1
= control target key start
LH: loop header
LB: loop body
LE: loop exit
PB: predicated region body
PF: predicated region fallthrough
CT: control target
= control target key end

     0   :  { %7 = vsyncpa [#allocation3], 0  ;;  %s232_s0 = inlined_call_operand.hbm [shape: f32[16,128], index: 0, kind: input, shape index: {}]   ;;  %s233_s1 = inlined_call_operand.hbm [shape: f32[16,128], index: 1, kind: input, shape index: {}]   ;;  %s234_s2 = inlined_call_operand.hbm [shape: f32[8,128], index: 2, kind: output, shape index: {}]  }
   0x1   :  { %8 = vsyncpa [#allocation6], 0 }
   0x2   :  { %9 = vsyncpa [#allocation4], 0  ;;  %s203_s9 = smov [#allocation2]  }
   0x3   :  { %s21_s10 = sshll.u32 %s203_s9, 4  ;;  %s22_s10 = int_to_ptr.vmem [resolvable:$true] %s21_s10 }
   0x4   :  { %s145_s11 = scalar_lea.vmem %s22_s10, 256  ;;  %p150_p1 = scmp.lt.s32.totalorder %s22_s10, %s22_s10 }
   0x5   :  { %p146_p0 = scmp.ne.s32.totalorder %s22_s10, %s145_s11  ;;  %p151_p2 = scmp.lt.s32.totalorder %s145_s11, %s145_s11 }
   0x7   :  { %p152_p3 = por %p151_p2, %p150_p1 }
   0x9   :  { %p153_p4 = pnand %p152_p3, %p146_p0 }
   0xb   :  { %156 = shalt.err (!%p153_p4)
}
   0xc   :  { %s204_s12 = smov 128   ;;  %s205_s13 = smov 8  }
   0xd   :  { %27 = dma.hbm_to_vmem [thread:$0]  %s232_s0, 256, %s22_s10, [#allocation3], %s204_s12, %s204_s12, %s205_s13  }
   0xe   :  { %s206_s16 = smov [#allocation5]  }
   0xf   :  { %s39_s17 = sshll.u32 %s206_s16, 4  ;;  %s40_s17 = int_to_ptr.vmem [resolvable:$true] %s39_s17 }
  0x10   :  { %s165_s18 = scalar_lea.vmem %s40_s17, 256  ;;  %p170_p6 = scmp.lt.s32.totalorder %s40_s17, %s40_s17 }
  0x11   :  { %p166_p5 = scmp.ne.s32.totalorder %s40_s17, %s165_s18  ;;  %p171_p7 = scmp.lt.s32.totalorder %s165_s18, %s165_s18 }
  0x13   :  { %p172_p8 = por %p171_p7, %p170_p6 }
  0x15   :  { %p173_p9 = pnand %p172_p8, %p166_p5 }
  0x17   :  { %176 = shalt.err (!%p173_p9)
}
  0x18   :  { %45 = dma.hbm_to_vmem [thread:$0]  %s233_s1, 256, %s40_s17, [#allocation6], %s204_s12, %s204_s12, %s205_s13  }
  0x19   :  { %197 = dma.done.wait [#allocation3], 256  }
  0x1a   :  { %198 = vsyncadd [#allocation3], 4294967040 }
  0x1b   :  { %199 = dma.done.wait [#allocation6], 256  }
  0x1c   :  { %200 = vsyncadd [#allocation6], 4294967040  ;;  %v65_v0 = vld [vmem:[#allocation2] sm:$0xff]  ;;  %v66_v1 = vld [vmem:[#allocation2 + $0x8] sm:$0xff]  ;;  %s207_s0 = smov [#allocation7]  }
  0x1d   :  { %v73_v2 = vadd.f32 1e-12, %v65_v0  ;;  %v74_v3 = vadd.f32 1e-12, %v66_v1  ;;  %v83_v4 = vsub.f32 1.0, %v65_v0  ;;  %v84_v5 = vsub.f32 1.0, %v66_v1 }
  0x1e   :  { %v67_v8 = vld [vmem:[#allocation5] sm:$0xff]  ;;  %v68_v10 = vld [vmem:[#allocation5 + $0x8] sm:$0xff]  ;;  %s109_s1 = sshll.u32 %s207_s0, 4  ;;  %s110_s1 = int_to_ptr.vmem [resolvable:$true] %s109_s1 }
  0x1f   :  { %129 = vlog2.f32 %v73_v2  ;;  %v85_v6 = vadd.f32 1e-12, %v83_v4  ;;  %v86_v7 = vadd.f32 1e-12, %v84_v5  ;;  %v69_v13 = vsub.f32 %v67_v8, %v65_v0  ;;  %s177_s21 = scalar_lea.vmem %s110_s1, 128  ;;  %p182_p11 = scmp.lt.s32.totalorder %s110_s1, %s110_s1 }
  0x20   :  { %131 = vlog2.f32 %v74_v3  ;;  %v81_v15 = vsub.f32 1.0, %v67_v8  ;;  %v70_v17 = vsub.f32 %v68_v10, %v66_v1  ;;  %v82_v18 = vsub.f32 1.0, %v68_v10  ;;  %p178_p10 = scmp.ne.s32.totalorder %s110_s1, %s177_s21  ;;  %p183_p12 = scmp.lt.s32.totalorder %s177_s21, %s177_s21 }
  0x21   :  { %133 = vlog2.f32 %v85_v6  ;;  %v71_v24 = vand.u32 2147483647, %v69_v13 }
  0x22   :  { %135 = vlog2.f32 %v86_v7  ;;  %v72_v26 = vand.u32 2147483647, %v70_v17  ;;  %p184_p13 = por %p183_p12, %p182_p11 }
  0x24   :  { %p185_p0 = pnand %p184_p13, %p178_p10 }
  0x2c   :  { %v130_v9 = vpop.eup %129 }
  0x2d   :  { %v132_v11 = vpop.eup %131  ;;  %v76_v12 = vmul.f32 0.6931472, %v130_v9 }
  0x2e   :  { %v78_v14 = vmul.f32 0.6931472, %v132_v11  ;;  %v134_v16 = vpop.eup %133 }
  0x2f   :  { %v136_v19 = vpop.eup %135  ;;  %v79_v20 = vmul.f32 %v76_v12, %v67_v8  ;;  %v88_v21 = vmul.f32 0.6931472, %v134_v16 }
  0x30   :  { %v80_v22 = vmul.f32 %v78_v14, %v68_v10  ;;  %v90_v23 = vmul.f32 0.6931472, %v136_v19 }
  0x31   :  { %v91_v25 = vmul.f32 %v88_v21, %v81_v15 }
  0x32   :  { %v92_v27 = vmul.f32 %v90_v23, %v82_v18 }
  0x33   :  { %v93_v28 = vadd.f32 %v91_v25, %v79_v20 }
  0x34   :  { %v94_v29 = vadd.f32 %v92_v27, %v80_v22 }
  0x35   :  { %v95_v30 = vmul.f32 %v93_v28, %v71_v24 }
  0x36   :  { %v96_v31 = vmul.f32 %v94_v29, %v72_v26 }
  0x37   :  { %v97_v32 = vsub.f32 0.0, %v95_v30 }
  0x38   :  { %v98_v33 = vsub.f32 0.0, %v96_v31 }
  0x3a   :  { %v100_v34 = vadd.f32 %v98_v33, %v97_v32 }
  0x3c   :  { %102 = vst [vmem:[#allocation7] sm:$0xff] %v100_v34 }
  0x3d   :  { %188 = shalt.err (!%p185_p0)
}
  0x3e   :  { %112 = dma.vmem_to_hbm [thread:$0]  %s110_s1, 128, %s234_s2, [#allocation4]  }
  0x3f   :  { %201 = dma.done.wait [#allocation4], 128  }
  0x40   :  { %202 = vsyncadd [#allocation4], 4294967168 }
  0x41   :  { %116 = vsyncpa [#allocation3], 1 }
  0x42   :  { %117 = vsyncpa [#allocation6], 1 }
  0x43   :  { %118 = vsyncpa [#allocation4], 1 }

</bundles_post_ra>
